<compile_context>
chip_gen: v5e
topology: v5e:2x2
jax: 0.10.0
libtpu: 0.0.40
codegen_flags: <defaults>
</compile_context>

<pallas_src>
import jax
import jax.numpy as jnp
import numpy as np
from jax.experimental import pallas as pl
from jax.experimental.pallas import tpu as pltpu

NUM_LAYERS = 4


def encoder_gru_kernel(x_ref, h0_ref, wih_ref, whh_pk_ref, b_ih_ref, b_hh_ref,
                       out_ref, hout_ref, gi0_ref):
    # x_ref     : (T, H)         bf16  pre-gathered embedded tokens
    # h0_ref    : (1, L*H)       f32   packed initial hidden [h_0 | h_1 | ...]
    # wih_ref   : (L, H, 3H)     bf16  fused, pre-transposed input weights
    # whh_pk_ref: (L*H, 3*L*H)   bf16  block-diagonal fused recurrent weights
    # b_ih_ref  : (L, 1, 3H)     f32
    # b_hh_ref  : (L, 1, 3H)     f32
    # out_ref   : (T, H)         f32   last-layer output per step
    # hout_ref  : (1, L*H)       f32   packed final hidden (resident state)
    # gi0_ref   : (T, 3H)        f32   VMEM scratch: hoisted layer-0 input proj
    T, H = x_ref.shape
    L = wih_ref.shape[0]

    # Pre-pass: layer-0 input projection for ALL timesteps in one matmul
    # (its operand does not depend on the recurrence, so M = T fills the MXU).
    gi0_ref[...] = (
        jnp.dot(x_ref[...], wih_ref[0], preferred_element_type=jnp.float32)
        + b_ih_ref[0])

    # Seed the resident packed hidden state.
    hout_ref[...] = h0_ref[...]

    @pl.loop(0, T)
    def _(t):
        h_pk = hout_ref[...]                                   # (1, L*H) f32
        # Recurrent projections for all layers & all gates in ONE matmul.
        gh_pk = jnp.dot(h_pk.astype(jnp.bfloat16), whh_pk_ref[...],
                        preferred_element_type=jnp.float32)    # (1, 3*L*H)

        x = None
        new_h = []
        for l in range(L):                       # serial cross-layer chain
            if l == 0:
                gi = gi0_ref[pl.ds(t, 1), :]     # (1, 3H), b_ih[0] already added
            else:
                gi = (jnp.dot(x, wih_ref[l], preferred_element_type=jnp.float32)
                      + b_ih_ref[l])             # (1, 3H)
            gh = gh_pk[:, l * 3 * H:(l + 1) * 3 * H] + b_hh_ref[l]   # (1, 3H)

            r = jax.nn.sigmoid(gi[:, :H] + gh[:, :H])
            z = jax.nn.sigmoid(gi[:, H:2 * H] + gh[:, H:2 * H])
            n = jnp.tanh(gi[:, 2 * H:] + r * gh[:, 2 * H:])
            h_prev_l = h_pk[:, l * H:(l + 1) * H]
            h_new = (1.0 - z) * n + z * h_prev_l                 # (1, H) f32

            new_h.append(h_new)
            x = h_new.astype(jnp.bfloat16)

        # Single lane-dense writes: packed hidden row + this step's output row.
        hout_ref[...] = jnp.concatenate(new_h, axis=1)           # (1, L*H)
        out_ref[pl.ds(t, 1), :] = new_h[-1]


def prepare_encoder_params(emb_table, w_ih, w_hh, b_ih, b_hh):
    """One-time (model-load) layout work: gate fusion, transposes, packing."""
    L, threeH, H = w_ih.shape
    assert L == NUM_LAYERS and threeH == 3 * H

    # Fused, pre-transposed input weights: x @ wih[l] == x @ W_ih[l]^T with
    # gate columns ordered [r | z | n] (PyTorch GRU gate order).
    wih = jnp.transpose(w_ih, (0, 2, 1)).astype(jnp.bfloat16)        # (L, H, 3H)

    # Block-diagonal packed recurrent weights: h_packed (1, L*H) @ whh_pk gives
    # [layer0 r|z|n | layer1 r|z|n | ...] in a single MXU op per timestep.
    whh_t = jnp.transpose(w_hh, (0, 2, 1)).astype(jnp.float32)       # (L, H, 3H)
    whh_pk = jnp.zeros((L * H, L * 3 * H), jnp.float32)
    for l in range(L):
        whh_pk = whh_pk.at[l * H:(l + 1) * H,
                           l * 3 * H:(l + 1) * 3 * H].set(whh_t[l])
    whh_pk = whh_pk.astype(jnp.bfloat16)
    # TODO(synk): for large H (L*H >> ~512) the block-diagonal layout wastes
    # VMEM (L x footprint); fall back to a per-layer batched einsum there.

    return dict(
        emb=emb_table.astype(jnp.bfloat16),         # bf16 table: halves gather bytes
        wih=wih, whh_pk=whh_pk,
        b_ih=b_ih[:, None, :].astype(jnp.float32),  # (L, 1, 3H)
        b_hh=b_hh[:, None, :].astype(jnp.float32),  # (L, 1, 3H)
        hidden_size=H)


def encoder_rnn_forward(tokens, hidden, params):
    """tokens: (T,) int32; hidden: (L,1,H) f32.  Returns ((T,1,H), (L,1,H))."""
    H = params['hidden_size']
    L = NUM_LAYERS
    tokens = jnp.asarray(tokens, jnp.int32).reshape(-1)
    T = tokens.shape[0]

    # nn.Embedding lookup: one contiguous (T, H) gather outside the kernel
    # (replaces T tiny data-dependent row DMAs inside it).
    x_emb = jnp.take(params['emb'], tokens, axis=0)                  # (T, H) bf16
    h0_pk = hidden.astype(jnp.float32).reshape(1, L * H)             # packed

    out_seq, h_out = pl.pallas_call(
        encoder_gru_kernel,
        out_shape=(
            jax.ShapeDtypeStruct((T, H), jnp.float32),
            jax.ShapeDtypeStruct((1, L * H), jnp.float32),
        ),
        scratch_shapes=[pltpu.VMEM((T, 3 * H), jnp.float32)],
        # No grid: the whole recurrence is one kernel invocation, so weights
        # are DMA'd once and never double-buffered.
        # TODO(synk): for very large H or very long T, tile T with an
        # "arbitrary" grid axis and set vmem_limit_bytes explicitly (v5e 16 MiB
        # / v7x 32 MiB default scoped limits); add a "parallel" batch axis if
        # multiple independent sequences ever exist (v7x dual TensorCore).
    )(x_emb, h0_pk, params['wih'], params['whh_pk'],
      params['b_ih'], params['b_hh'])

    # PyTorch GRU semantics for a (T, 1, H) input: output (T,1,H), hidden (L,1,H).
    return out_seq.reshape(T, 1, H), h_out.reshape(L, 1, H)


def gru_reference(tokens, h0, emb_table, w_ih, w_hh, b_ih, b_hh):
    """Pure-JAX f32 reference: PyTorch 4-layer GRU applied one token at a time."""
    L, threeH, H = w_ih.shape
    h = h0
    outs = []
    for tok in np.asarray(tokens):
        x = emb_table[int(tok)].reshape(1, H)
        new_h = []
        for l in range(L):
            hl = h[l]
            gi = x @ w_ih[l].T + b_ih[l]
            gh = hl @ w_hh[l].T + b_hh[l]
            r = jax.nn.sigmoid(gi[:, :H] + gh[:, :H])
            z = jax.nn.sigmoid(gi[:, H:2 * H] + gh[:, H:2 * H])
            n = jnp.tanh(gi[:, 2 * H:] + r * gh[:, 2 * H:])
            hl = (1.0 - z) * n + z * hl
            new_h.append(hl)
            x = hl
        h = jnp.stack(new_h, axis=0)
        outs.append(x)
    return jnp.stack(outs, axis=0), h            # (T, 1, H), (L, 1, H)


if __name__ == "__main__":
    H = 32           # hidden_size == embedding dim (forward requires emb_dim == hidden_size)
    L = NUM_LAYERS   # num_layers = 4  (L*H = 128 -> one full lane row)
    V_pre = 10       # pretrained vocab rows
    T = 8            # sequence length processed in ONE pallas_call

    key = jax.random.PRNGKey(0)
    k_emb, k_wih, k_whh, k_bih, k_bhh, k_tok = jax.random.split(key, 6)

    # Embedding table built the same way the module does: [pad, unk(mean), pretrained]
    embs = jax.random.normal(k_emb, (V_pre, H), dtype=jnp.float32) * 0.1
    pad_row = jnp.zeros((1, H), jnp.float32)
    unk_row = jnp.mean(embs, axis=0, keepdims=True)
    emb_table = jnp.concatenate([pad_row, unk_row, embs], axis=0)    # (V_pre+2, H)

    # Deterministic GRU parameters (PyTorch layout: (L, 3H, H) / (L, 3H), gate order r,z,n)
    bound = 1.0 / np.sqrt(H)
    w_ih = jax.random.uniform(k_wih, (L, 3 * H, H), jnp.float32, -bound, bound)
    w_hh = jax.random.uniform(k_whh, (L, 3 * H, H), jnp.float32, -bound, bound)
    b_ih = jax.random.uniform(k_bih, (L, 3 * H), jnp.float32, -bound, bound)
    b_hh = jax.random.uniform(k_bhh, (L, 3 * H), jnp.float32, -bound, bound)

    tokens = jax.random.randint(k_tok, (T,), 0, V_pre + 2, dtype=jnp.int32)
    hidden0 = jnp.zeros((L, 1, H), jnp.float32)   # initHidden()

    params = prepare_encoder_params(emb_table, w_ih, w_hh, b_ih, b_hh)  # one-time

    out, h_out = encoder_rnn_forward(tokens, hidden0, params)
    jax.block_until_ready((out, h_out))

    assert out.shape == (T, 1, H) and h_out.shape == (L, 1, H)

    # Correctness vs pure-f32 PyTorch semantics; the kernel uses bf16 weights /
    # activations for the matmuls (f32 accumulation), so tolerances reflect that.
    out_ref, h_ref = gru_reference(tokens, hidden0, emb_table, w_ih, w_hh, b_ih, b_hh)
    np.testing.assert_allclose(np.asarray(out), np.asarray(out_ref), rtol=2e-2, atol=2e-2)
    np.testing.assert_allclose(np.asarray(h_out), np.asarray(h_ref), rtol=2e-2, atol=2e-2)

    print("KERNEL_OK")
</pallas_src>

<mosaic_0001>
module attributes {stable_mosaic.version = 11 : i64} {
  func.func @encoder_gru_kernel(%arg0: memref<8x32xbf16, #tpu.memory_space<vmem>>, %arg1: memref<1x128xf32, #tpu.memory_space<vmem>>, %arg2: memref<4x32x96xbf16, #tpu.memory_space<vmem>>, %arg3: memref<128x384xbf16, #tpu.memory_space<vmem>>, %arg4: memref<4x1x96xf32, #tpu.memory_space<vmem>>, %arg5: memref<4x1x96xf32, #tpu.memory_space<vmem>>, %arg6: memref<8x32xf32, #tpu.memory_space<vmem>>, %arg7: memref<1x128xf32, #tpu.memory_space<vmem>>, %arg8: memref<8x96xf32, #tpu.memory_space<vmem>>) attributes {dimension_semantics = [], scalar_prefetch = 0 : i64, scratch_operands = 1 : i64, tpu.core_type = #tpu.core_type<tc>} {
    %c0 = arith.constant 0 : index
    %c0_0 = arith.constant 0 : index
    %0 = vector.load %arg0[%c0, %c0_0] : memref<8x32xbf16, #tpu.memory_space<vmem>>, vector<8x32xbf16>
    %c0_1 = arith.constant 0 : index
    %c0_2 = arith.constant 0 : index
    %c0_3 = arith.constant 0 : index
    %1 = vector.load %arg2[%c0_1, %c0_2, %c0_3] : memref<4x32x96xbf16, #tpu.memory_space<vmem>>, vector<1x32x96xbf16>
    %2 = vector.shape_cast %1 : vector<1x32x96xbf16> to vector<32x96xbf16>
    %cst = arith.constant dense<0.000000e+00> : vector<8x96xf32>
    %3 = tpu.matmul %0, %2, %cst {dimension_numbers = #tpu.dot_dimension_numbers<[1], [0], [0], [1], [0, 0, 1, 1], [], []>} : vector<8x32xbf16>, vector<32x96xbf16>, vector<8x96xf32> -> vector<8x96xf32>
    %c0_4 = arith.constant 0 : index
    %c0_5 = arith.constant 0 : index
    %c0_6 = arith.constant 0 : index
    %4 = vector.load %arg4[%c0_4, %c0_5, %c0_6] : memref<4x1x96xf32, #tpu.memory_space<vmem>>, vector<1x1x96xf32>
    %5 = vector.shape_cast %4 : vector<1x1x96xf32> to vector<1x96xf32>
    %6 = vector.broadcast %5 : vector<1x96xf32> to vector<8x96xf32>
    %7 = arith.addf %3, %6 : vector<8x96xf32>
    %c0_7 = arith.constant 0 : index
    %c0_8 = arith.constant 0 : index
    %8 = vector.load %arg8[%c0_7, %c0_8] : memref<8x96xf32, #tpu.memory_space<vmem>>, vector<8x96xf32>
    tpu.vector_store %arg8[%c0_7, %c0_8], %7 {strides = array<i32>} : memref<8x96xf32, #tpu.memory_space<vmem>>, vector<8x96xf32>,
    %c0_9 = arith.constant 0 : index
    %c0_10 = arith.constant 0 : index
    %9 = vector.load %arg1[%c0_9, %c0_10] : memref<1x128xf32, #tpu.memory_space<vmem>>, vector<1x128xf32>
    %c0_11 = arith.constant 0 : index
    %c0_12 = arith.constant 0 : index
    %10 = vector.load %arg7[%c0_11, %c0_12] : memref<1x128xf32, #tpu.memory_space<vmem>>, vector<1x128xf32>
    tpu.vector_store %arg7[%c0_11, %c0_12], %9 {strides = array<i32>} : memref<1x128xf32, #tpu.memory_space<vmem>>, vector<1x128xf32>,
    %c0_i32 = arith.constant 0 : i32
    %c8_i32 = arith.constant 8 : i32
    %11 = arith.addi %c0_i32, %c8_i32 : i32
    %c1_i32 = arith.constant 1 : i32
    scf.for %arg9 = %c0_i32 to %11 step %c1_i32  : i32 {
      %c1_i32_14 = arith.constant 1 : i32
      %12 = arith.muli %arg9, %c1_i32_14 : i32
      %c0_i32_15 = arith.constant 0 : i32
      %13 = arith.addi %c0_i32_15, %12 : i32
      %c0_16 = arith.constant 0 : index
      %c0_17 = arith.constant 0 : index
      %14 = vector.load %arg7[%c0_16, %c0_17] : memref<1x128xf32, #tpu.memory_space<vmem>>, vector<1x128xf32>
      %15 = arith.truncf %14 : vector<1x128xf32> to vector<1x128xbf16>
      %c0_18 = arith.constant 0 : index
      %c0_19 = arith.constant 0 : index
      %16 = vector.load %arg3[%c0_18, %c0_19] : memref<128x384xbf16, #tpu.memory_space<vmem>>, vector<128x384xbf16>
      %cst_20 = arith.constant dense<0.000000e+00> : vector<1x384xf32>
      %17 = tpu.matmul %15, %16, %cst_20 {dimension_numbers = #tpu.dot_dimension_numbers<[1], [0], [0], [1], [0, 0, 1, 1], [], []>} : vector<1x128xbf16>, vector<128x384xbf16>, vector<1x384xf32> -> vector<1x384xf32>
      %18 = arith.index_cast %13 : i32 to index
      %c0_21 = arith.constant 0 : index
      %19 = vector.load %arg8[%18, %c0_21] : memref<8x96xf32, #tpu.memory_space<vmem>>, vector<1x96xf32>
      %20 = vector.extract_strided_slice %17 {offsets = [0, 0], sizes = [1, 96], strides = [1, 1]} : vector<1x384xf32> to vector<1x96xf32>
      %c0_22 = arith.constant 0 : index
      %c0_23 = arith.constant 0 : index
      %c0_24 = arith.constant 0 : index
      %21 = vector.load %arg5[%c0_22, %c0_23, %c0_24] : memref<4x1x96xf32, #tpu.memory_space<vmem>>, vector<1x1x96xf32>
      %22 = vector.shape_cast %21 : vector<1x1x96xf32> to vector<1x96xf32>
      %23 = arith.addf %20, %22 : vector<1x96xf32>
      %24 = vector.extract_strided_slice %19 {offsets = [0, 0], sizes = [1, 32], strides = [1, 1]} : vector<1x96xf32> to vector<1x32xf32>
      %25 = vector.extract_strided_slice %23 {offsets = [0, 0], sizes = [1, 32], strides = [1, 1]} : vector<1x96xf32> to vector<1x32xf32>
      %26 = arith.addf %24, %25 : vector<1x32xf32>
      %27 = arith.negf %26 : vector<1x32xf32>
      %28 = math.exp %27 : vector<1x32xf32>
      %cst_25 = arith.constant 1.000000e+00 : f32
      %29 = vector.broadcast %cst_25 : f32 to vector<1x32xf32>
      %30 = arith.addf %29, %28 : vector<1x32xf32>
      %31 = arith.divf %29, %30 : vector<1x32xf32>
      %32 = vector.extract_strided_slice %19 {offsets = [0, 32], sizes = [1, 32], strides = [1, 1]} : vector<1x96xf32> to vector<1x32xf32>
      %33 = vector.extract_strided_slice %23 {offsets = [0, 32], sizes = [1, 32], strides = [1, 1]} : vector<1x96xf32> to vector<1x32xf32>
      %34 = arith.addf %32, %33 : vector<1x32xf32>
      %35 = arith.negf %34 : vector<1x32xf32>
      %36 = math.exp %35 : vector<1x32xf32>
      %cst_26 = arith.constant 1.000000e+00 : f32
      %37 = vector.broadcast %cst_26 : f32 to vector<1x32xf32>
      %38 = arith.addf %37, %36 : vector<1x32xf32>
      %39 = arith.divf %37, %38 : vector<1x32xf32>
      %40 = vector.extract_strided_slice %19 {offsets = [0, 64], sizes = [1, 32], strides = [1, 1]} : vector<1x96xf32> to vector<1x32xf32>
      %41 = vector.extract_strided_slice %23 {offsets = [0, 64], sizes = [1, 32], strides = [1, 1]} : vector<1x96xf32> to vector<1x32xf32>
      %42 = arith.mulf %31, %41 : vector<1x32xf32>
      %43 = arith.addf %40, %42 : vector<1x32xf32>
      %44 = math.tanh %43 : vector<1x32xf32>
      %45 = vector.extract_strided_slice %14 {offsets = [0, 0], sizes = [1, 32], strides = [1, 1]} : vector<1x128xf32> to vector<1x32xf32>
      %cst_27 = arith.constant 1.000000e+00 : f32
      %46 = vector.broadcast %cst_27 : f32 to vector<1x32xf32>
      %47 = arith.subf %46, %39 : vector<1x32xf32>
      %48 = arith.mulf %47, %44 : vector<1x32xf32>
      %49 = arith.mulf %39, %45 : vector<1x32xf32>
      %50 = arith.addf %48, %49 : vector<1x32xf32>
      %51 = arith.truncf %50 : vector<1x32xf32> to vector<1x32xbf16>
      %c1 = arith.constant 1 : index
      %c0_28 = arith.constant 0 : index
      %c0_29 = arith.constant 0 : index
      %52 = vector.load %arg2[%c1, %c0_28, %c0_29] : memref<4x32x96xbf16, #tpu.memory_space<vmem>>, vector<1x32x96xbf16>
      %53 = vector.shape_cast %52 : vector<1x32x96xbf16> to vector<32x96xbf16>
      %cst_30 = arith.constant dense<0.000000e+00> : vector<1x96xf32>
      %54 = tpu.matmul %51, %53, %cst_30 {dimension_numbers = #tpu.dot_dimension_numbers<[1], [0], [0], [1], [0, 0, 1, 1], [], []>} : vector<1x32xbf16>, vector<32x96xbf16>, vector<1x96xf32> -> vector<1x96xf32>
      %c1_31 = arith.constant 1 : index
      %c0_32 = arith.constant 0 : index
      %c0_33 = arith.constant 0 : index
      %55 = vector.load %arg4[%c1_31, %c0_32, %c0_33] : memref<4x1x96xf32, #tpu.memory_space<vmem>>, vector<1x1x96xf32>
      %56 = vector.shape_cast %55 : vector<1x1x96xf32> to vector<1x96xf32>
      %57 = arith.addf %54, %56 : vector<1x96xf32>
      %58 = vector.extract_strided_slice %17 {offsets = [0, 96], sizes = [1, 96], strides = [1, 1]} : vector<1x384xf32> to vector<1x96xf32>
      %c1_34 = arith.constant 1 : index
      %c0_35 = arith.constant 0 : index
      %c0_36 = arith.constant 0 : index
      %59 = vector.load %arg5[%c1_34, %c0_35, %c0_36] : memref<4x1x96xf32, #tpu.memory_space<vmem>>, vector<1x1x96xf32>
      %60 = vector.shape_cast %59 : vector<1x1x96xf32> to vector<1x96xf32>
      %61 = arith.addf %58, %60 : vector<1x96xf32>
      %62 = vector.extract_strided_slice %57 {offsets = [0, 0], sizes = [1, 32], strides = [1, 1]} : vector<1x96xf32> to vector<1x32xf32>
      %63 = vector.extract_strided_slice %61 {offsets = [0, 0], sizes = [1, 32], strides = [1, 1]} : vector<1x96xf32> to vector<1x32xf32>
      %64 = arith.addf %62, %63 : vector<1x32xf32>
      %65 = arith.negf %64 : vector<1x32xf32>
      %66 = math.exp %65 : vector<1x32xf32>
      %cst_37 = arith.constant 1.000000e+00 : f32
      %67 = vector.broadcast %cst_37 : f32 to vector<1x32xf32>
      %68 = arith.addf %67, %66 : vector<1x32xf32>
      %69 = arith.divf %67, %68 : vector<1x32xf32>
      %70 = vector.extract_strided_slice %57 {offsets = [0, 32], sizes = [1, 32], strides = [1, 1]} : vector<1x96xf32> to vector<1x32xf32>
      %71 = vector.extract_strided_slice %61 {offsets = [0, 32], sizes = [1, 32], strides = [1, 1]} : vector<1x96xf32> to vector<1x32xf32>
      %72 = arith.addf %70, %71 : vector<1x32xf32>
      %73 = arith.negf %72 : vector<1x32xf32>
      %74 = math.exp %73 : vector<1x32xf32>
      %cst_38 = arith.constant 1.000000e+00 : f32
      %75 = vector.broadcast %cst_38 : f32 to vector<1x32xf32>
      %76 = arith.addf %75, %74 : vector<1x32xf32>
      %77 = arith.divf %75, %76 : vector<1x32xf32>
      %78 = vector.extract_strided_slice %57 {offsets = [0, 64], sizes = [1, 32], strides = [1, 1]} : vector<1x96xf32> to vector<1x32xf32>
      %79 = vector.extract_strided_slice %61 {offsets = [0, 64], sizes = [1, 32], strides = [1, 1]} : vector<1x96xf32> to vector<1x32xf32>
      %80 = arith.mulf %69, %79 : vector<1x32xf32>
      %81 = arith.addf %78, %80 : vector<1x32xf32>
      %82 = math.tanh %81 : vector<1x32xf32>
      %83 = vector.extract_strided_slice %14 {offsets = [0, 32], sizes = [1, 32], strides = [1, 1]} : vector<1x128xf32> to vector<1x32xf32>
      %cst_39 = arith.constant 1.000000e+00 : f32
      %84 = vector.broadcast %cst_39 : f32 to vector<1x32xf32>
      %85 = arith.subf %84, %77 : vector<1x32xf32>
      %86 = arith.mulf %85, %82 : vector<1x32xf32>
      %87 = arith.mulf %77, %83 : vector<1x32xf32>
      %88 = arith.addf %86, %87 : vector<1x32xf32>
      %89 = arith.truncf %88 : vector<1x32xf32> to vector<1x32xbf16>
      %c2 = arith.constant 2 : index
      %c0_40 = arith.constant 0 : index
      %c0_41 = arith.constant 0 : index
      %90 = vector.load %arg2[%c2, %c0_40, %c0_41] : memref<4x32x96xbf16, #tpu.memory_space<vmem>>, vector<1x32x96xbf16>
      %91 = vector.shape_cast %90 : vector<1x32x96xbf16> to vector<32x96xbf16>
      %cst_42 = arith.constant dense<0.000000e+00> : vector<1x96xf32>
      %92 = tpu.matmul %89, %91, %cst_42 {dimension_numbers = #tpu.dot_dimension_numbers<[1], [0], [0], [1], [0, 0, 1, 1], [], []>} : vector<1x32xbf16>, vector<32x96xbf16>, vector<1x96xf32> -> vector<1x96xf32>
      %c2_43 = arith.constant 2 : index
      %c0_44 = arith.constant 0 : index
      %c0_45 = arith.constant 0 : index
      %93 = vector.load %arg4[%c2_43, %c0_44, %c0_45] : memref<4x1x96xf32, #tpu.memory_space<vmem>>, vector<1x1x96xf32>
      %94 = vector.shape_cast %93 : vector<1x1x96xf32> to vector<1x96xf32>
      %95 = arith.addf %92, %94 : vector<1x96xf32>
      %96 = vector.extract_strided_slice %17 {offsets = [0, 192], sizes = [1, 96], strides = [1, 1]} : vector<1x384xf32> to vector<1x96xf32>
      %c2_46 = arith.constant 2 : index
      %c0_47 = arith.constant 0 : index
      %c0_48 = arith.constant 0 : index
      %97 = vector.load %arg5[%c2_46, %c0_47, %c0_48] : memref<4x1x96xf32, #tpu.memory_space<vmem>>, vector<1x1x96xf32>
      %98 = vector.shape_cast %97 : vector<1x1x96xf32> to vector<1x96xf32>
      %99 = arith.addf %96, %98 : vector<1x96xf32>
      %100 = vector.extract_strided_slice %95 {offsets = [0, 0], sizes = [1, 32], strides = [1, 1]} : vector<1x96xf32> to vector<1x32xf32>
      %101 = vector.extract_strided_slice %99 {offsets = [0, 0], sizes = [1, 32], strides = [1, 1]} : vector<1x96xf32> to vector<1x32xf32>
      %102 = arith.addf %100, %101 : vector<1x32xf32>
      %103 = arith.negf %102 : vector<1x32xf32>
      %104 = math.exp %103 : vector<1x32xf32>
      %cst_49 = arith.constant 1.000000e+00 : f32
      %105 = vector.broadcast %cst_49 : f32 to vector<1x32xf32>
      %106 = arith.addf %105, %104 : vector<1x32xf32>
      %107 = arith.divf %105, %106 : vector<1x32xf32>
      %108 = vector.extract_strided_slice %95 {offsets = [0, 32], sizes = [1, 32], strides = [1, 1]} : vector<1x96xf32> to vector<1x32xf32>
      %109 = vector.extract_strided_slice %99 {offsets = [0, 32], sizes = [1, 32], strides = [1, 1]} : vector<1x96xf32> to vector<1x32xf32>
      %110 = arith.addf %108, %109 : vector<1x32xf32>
      %111 = arith.negf %110 : vector<1x32xf32>
      %112 = math.exp %111 : vector<1x32xf32>
      %cst_50 = arith.constant 1.000000e+00 : f32
      %113 = vector.broadcast %cst_50 : f32 to vector<1x32xf32>
      %114 = arith.addf %113, %112 : vector<1x32xf32>
      %115 = arith.divf %113, %114 : vector<1x32xf32>
      %116 = vector.extract_strided_slice %95 {offsets = [0, 64], sizes = [1, 32], strides = [1, 1]} : vector<1x96xf32> to vector<1x32xf32>
      %117 = vector.extract_strided_slice %99 {offsets = [0, 64], sizes = [1, 32], strides = [1, 1]} : vector<1x96xf32> to vector<1x32xf32>
      %118 = arith.mulf %107, %117 : vector<1x32xf32>
      %119 = arith.addf %116, %118 : vector<1x32xf32>
      %120 = math.tanh %119 : vector<1x32xf32>
      %121 = vector.extract_strided_slice %14 {offsets = [0, 64], sizes = [1, 32], strides = [1, 1]} : vector<1x128xf32> to vector<1x32xf32>
      %cst_51 = arith.constant 1.000000e+00 : f32
      %122 = vector.broadcast %cst_51 : f32 to vector<1x32xf32>
      %123 = arith.subf %122, %115 : vector<1x32xf32>
      %124 = arith.mulf %123, %120 : vector<1x32xf32>
      %125 = arith.mulf %115, %121 : vector<1x32xf32>
      %126 = arith.addf %124, %125 : vector<1x32xf32>
      %127 = arith.truncf %126 : vector<1x32xf32> to vector<1x32xbf16>
      %c3 = arith.constant 3 : index
      %c0_52 = arith.constant 0 : index
      %c0_53 = arith.constant 0 : index
      %128 = vector.load %arg2[%c3, %c0_52, %c0_53] : memref<4x32x96xbf16, #tpu.memory_space<vmem>>, vector<1x32x96xbf16>
      %129 = vector.shape_cast %128 : vector<1x32x96xbf16> to vector<32x96xbf16>
      %cst_54 = arith.constant dense<0.000000e+00> : vector<1x96xf32>
      %130 = tpu.matmul %127, %129, %cst_54 {dimension_numbers = #tpu.dot_dimension_numbers<[1], [0], [0], [1], [0, 0, 1, 1], [], []>} : vector<1x32xbf16>, vector<32x96xbf16>, vector<1x96xf32> -> vector<1x96xf32>
      %c3_55 = arith.constant 3 : index
      %c0_56 = arith.constant 0 : index
      %c0_57 = arith.constant 0 : index
      %131 = vector.load %arg4[%c3_55, %c0_56, %c0_57] : memref<4x1x96xf32, #tpu.memory_space<vmem>>, vector<1x1x96xf32>
      %132 = vector.shape_cast %131 : vector<1x1x96xf32> to vector<1x96xf32>
      %133 = arith.addf %130, %132 : vector<1x96xf32>
      %134 = vector.extract_strided_slice %17 {offsets = [0, 288], sizes = [1, 96], strides = [1, 1]} : vector<1x384xf32> to vector<1x96xf32>
      %c3_58 = arith.constant 3 : index
      %c0_59 = arith.constant 0 : index
      %c0_60 = arith.constant 0 : index
      %135 = vector.load %arg5[%c3_58, %c0_59, %c0_60] : memref<4x1x96xf32, #tpu.memory_space<vmem>>, vector<1x1x96xf32>
      %136 = vector.shape_cast %135 : vector<1x1x96xf32> to vector<1x96xf32>
      %137 = arith.addf %134, %136 : vector<1x96xf32>
      %138 = vector.extract_strided_slice %133 {offsets = [0, 0], sizes = [1, 32], strides = [1, 1]} : vector<1x96xf32> to vector<1x32xf32>
      %139 = vector.extract_strided_slice %137 {offsets = [0, 0], sizes = [1, 32], strides = [1, 1]} : vector<1x96xf32> to vector<1x32xf32>
      %140 = arith.addf %138, %139 : vector<1x32xf32>
      %141 = arith.negf %140 : vector<1x32xf32>
      %142 = math.exp %141 : vector<1x32xf32>
      %cst_61 = arith.constant 1.000000e+00 : f32
      %143 = vector.broadcast %cst_61 : f32 to vector<1x32xf32>
      %144 = arith.addf %143, %142 : vector<1x32xf32>
      %145 = arith.divf %143, %144 : vector<1x32xf32>
      %146 = vector.extract_strided_slice %133 {offsets = [0, 32], sizes = [1, 32], strides = [1, 1]} : vector<1x96xf32> to vector<1x32xf32>
      %147 = vector.extract_strided_slice %137 {offsets = [0, 32], sizes = [1, 32], strides = [1, 1]} : vector<1x96xf32> to vector<1x32xf32>
      %148 = arith.addf %146, %147 : vector<1x32xf32>
      %149 = arith.negf %148 : vector<1x32xf32>
      %150 = math.exp %149 : vector<1x32xf32>
      %cst_62 = arith.constant 1.000000e+00 : f32
      %151 = vector.broadcast %cst_62 : f32 to vector<1x32xf32>
      %152 = arith.addf %151, %150 : vector<1x32xf32>
      %153 = arith.divf %151, %152 : vector<1x32xf32>
      %154 = vector.extract_strided_slice %133 {offsets = [0, 64], sizes = [1, 32], strides = [1, 1]} : vector<1x96xf32> to vector<1x32xf32>
      %155 = vector.extract_strided_slice %137 {offsets = [0, 64], sizes = [1, 32], strides = [1, 1]} : vector<1x96xf32> to vector<1x32xf32>
      %156 = arith.mulf %145, %155 : vector<1x32xf32>
      %157 = arith.addf %154, %156 : vector<1x32xf32>
      %158 = math.tanh %157 : vector<1x32xf32>
      %159 = vector.extract_strided_slice %14 {offsets = [0, 96], sizes = [1, 32], strides = [1, 1]} : vector<1x128xf32> to vector<1x32xf32>
      %cst_63 = arith.constant 1.000000e+00 : f32
      %160 = vector.broadcast %cst_63 : f32 to vector<1x32xf32>
      %161 = arith.subf %160, %153 : vector<1x32xf32>
      %162 = arith.mulf %161, %158 : vector<1x32xf32>
      %163 = arith.mulf %153, %159 : vector<1x32xf32>
      %164 = arith.addf %162, %163 : vector<1x32xf32>
      %165 = tpu.concatenate %50, %88, %126, %164 in 1 : vector<1x32xf32>, vector<1x32xf32>, vector<1x32xf32>, vector<1x32xf32> -> vector<1x128xf32>
      %c0_64 = arith.constant 0 : index
      %c0_65 = arith.constant 0 : index
      %166 = vector.load %arg7[%c0_64, %c0_65] : memref<1x128xf32, #tpu.memory_space<vmem>>, vector<1x128xf32>
      tpu.vector_store %arg7[%c0_64, %c0_65], %165 {strides = array<i32>} : memref<1x128xf32, #tpu.memory_space<vmem>>, vector<1x128xf32>,
      %167 = arith.index_cast %13 : i32 to index
      %c0_66 = arith.constant 0 : index
      %168 = vector.load %arg6[%167, %c0_66] : memref<8x32xf32, #tpu.memory_space<vmem>>, vector<1x32xf32>
      tpu.vector_store %arg6[%167, %c0_66], %164 {strides = array<i32>} : memref<8x32xf32, #tpu.memory_space<vmem>>, vector<1x32xf32>,
    }
    %c8_i32_13 = arith.constant 8 : i32
    return
  }
}

</mosaic_0001>

<bundles_post_ra>
// kernel: tpu_custom_call.1
= control target key start
LH: loop header
LB: loop body
LE: loop exit
PB: predicated region body
PF: predicated region fallthrough
CT: control target
= control target key end

     0   :  { %13 = vsyncpa [#allocation4], 0  ;;  %s1351_s0 = inlined_call_operand.hbm [shape: bf16[8,32], index: 0, kind: input, shape index: {}]   ;;  %s1352_s1 = inlined_call_operand.hbm [shape: f32[1,128], index: 1, kind: input, shape index: {}]   ;;  %s1353_s2 = inlined_call_operand.hbm [shape: bf16[4,32,96], index: 2, kind: input, shape index: {}]   ;;  %s1354_s3 = inlined_call_operand.hbm [shape: bf16[128,384], index: 3, kind: input, shape index: {}]   ;;  %s1355_s4 = inlined_call_operand.hbm [shape: f32[4,1,96], index: 4, kind: input, shape index: {}]   ;;  %s1356_s5 = inlined_call_operand.vmem [shape: f32[4,1,96], index: 5, kind: input, shape index: {}]   ;;  %s1357_s6 = inlined_call_operand.hbm [shape: f32[8,32], index: 6, kind: output, shape index: {0}]   ;;  %s1358_s7 = inlined_call_operand.hbm [shape: f32[1,128], index: 7, kind: output, shape index: {1}]  }
   0x1   :  { %14 = vsyncpa [#allocation7], 0 }
   0x2   :  { %15 = vsyncpa [#allocation10], 0 }
   0x3   :  { %16 = vsyncpa [#allocation5], 0  ;;  %s34_s26 = sshll.u32 %s1352_s1, 4  ;;  %s35_s26 = int_to_ptr.hbm [resolvable:$true] %s34_s26 }
   0x4   :  { %17 = vsyncpa [#allocation14], 0  ;;  %s1175_s27 = smov [#allocation6]   ;;  %s57_s8 = sshll.u32 %s1354_s3, 4  ;;  %s58_s8 = int_to_ptr.hbm [resolvable:$true] %s57_s8 }
   0x5   :  { %s36_s28 = sshll.u32 %s1175_s27, 4  ;;  %s1176_s9 = smov [#allocation9]   ;;  %s37_s28 = int_to_ptr.vmem [resolvable:$true] %s36_s28 }
   0x6   :  { %39 = dma.hbm_to_vmem [thread:$0]  %s35_s26, 16, %s37_s28, [#allocation7]  }
   0x7   :  { %s59_s10 = sshll.u32 %s1176_s9, 4  ;;  %s1177_s11 = smov 192   ;;  %s60_s10 = int_to_ptr.vmem [resolvable:$true] %s59_s10 }
   0x8   :  { %s1178_s12 = smov 12   ;;  %s23_s1 = sshll.u32 %s1351_s0, 4  ;;  %s24_s1 = int_to_ptr.hbm [resolvable:$true] %s23_s1 }
   0x9   :  { %65 = dma.hbm_to_vmem [thread:$0]  %s58_s8, 3072, %s60_s10, [#allocation10], %s1177_s11, %s1177_s11, %s1178_s12  }
   0xa   :  { %s1179_s15 = smov [#allocation3]   ;;  %s44_s3 = sshll.u32 %s1353_s2, 4  ;;  %s45_s3 = int_to_ptr.hbm [resolvable:$true] %s44_s3 }
   0xb   :  { %s25_s16 = sshll.u32 %s1179_s15, 4  ;;  %s1180_s19 = smov [#allocation8]   ;;  %s26_s16 = int_to_ptr.vmem [resolvable:$true] %s25_s16 }
   0xc   :  { %28 = dma.hbm_to_vmem [thread:$0]  %s24_s1, 64, %s26_s16, [#allocation4]  }
   0xd   :  { %s46_s20 = sshll.u32 %s1180_s19, 4  ;;  %s1181_s21 = smov 64   ;;  %s47_s20 = int_to_ptr.vmem [resolvable:$true] %s46_s20 }
   0xe   :  { %s1182_s22 = smov 4   ;;  %s70_s0 = sshll.u32 %s1355_s4, 4  ;;  %s71_s0 = int_to_ptr.hbm [resolvable:$true] %s70_s0 }
   0xf   :  { %52 = dma.hbm_to_vmem [thread:$0]  %s45_s3, 1024, %s47_s20, [#allocation7], %s1181_s21, %s1181_s21, %s1182_s22  }
  0x10   :  { %s1183_s25 = smov [#allocation11]   ;;  %s1184_s27 = smov 16  }
  0x11   :  { %s72_s26 = sshll.u32 %s1183_s25, 4  ;;  %s1185_s28 = smov 1   ;;  %s73_s26 = int_to_ptr.vmem [resolvable:$true] %s72_s26 }
  0x12   :  { %78 = dma.hbm_to_vmem [thread:$0]  %s71_s0, 64, %s73_s26, [#allocation10], %s1184_s27, %s1184_s27, %s1185_s28  }
  0x13   :  { %1161 = dma.done.wait [#allocation4], 64  }
  0x14   :  { %1162 = vsyncadd [#allocation4], 4294967232 }
  0x15   :  { %1163 = dma.done.wait [#allocation7], 1040  }
  0x16   :  { %1164 = vsyncadd [#allocation7], 4294966256 }
  0x17   :  { %1165 = dma.done.wait [#allocation10], 3136  }
  0x18   :  { %1166 = vsyncadd [#allocation10], 4294964160  ;;  %v142_v0 = vld [vmem:[#allocation6] sm:$0x1]  ;;  %v901_v1 = vld [vmem:[#allocation8 + $0x8] sm:$0xff]  ;;  %vm123_vm0 = vcmask 261120  }
  0x19   :  { %143 = vst [vmem:[#allocation13] sm:$0x1] %v142_v0  ;;  %133 = vmatpush.bf16.msra.mxu0 %v901_v1  ;;  %v900_v2 = vld [vmem:[#allocation8] sm:$0xff]  ;;  %v102_v3 = vld [vmem:[#allocation3] sm:$0xf]  ;;  %vm140_vm1 = vcmask 785408  }
  0x1a   :  { %v956_v4 = vld [vmem:[#allocation11] ss:$0 sm:$0xff]  ;;  %s1248_s2 = smov 0  }
  0x1d   :  { %134 = vmatpush.bf16.msra.mxu0 %v900_v2 }
  0x20   :  { %768 = vmatmul.msk.bf16.vlgmr.msra.gmra.mxu0 %vm123_vm0, %v102_v3 }
  0x9d   :  { %v136_v5 = vpop.f32.mrf.mxu0 }
  0x9e   :  { %v137_v6 = vadd.f32 %v956_v4, %v136_v5 }
  0xa0   :  { %141 = vst.msk [vmem:[#allocation2] sm:$0xff] %vm140_vm1, %v137_v6 }
  0xa5   :  { %v138_v7 = vpop.f32.mrf.mxu0 }
  0xa6 LB: > { %v855_v8 = vld [vmem:[#allocation9 + $0xa8] sm:$0xf]  ;;  %v924_v9 = vld [vmem:[#allocation9 + $0xb0] sm:$0xf0]  ;;  %v843_v10 = vld [vmem:[#allocation9 + $0x90] sm:$0xf]  ;;  %s1173_s2 = sphi %s1248_s2, %s149_s2  }
  0xa7   : > { %v856_v11 = vor.u32 %v924_v9, %v855_v8  ;;  %v921_v12 = vld [vmem:[#allocation9 + $0x98] sm:$0xf0]  ;;  %v831_v14 = vld [vmem:[#allocation9 + $0x78] sm:$0xf]  ;;  %v918_v15 = vld [vmem:[#allocation9 + $0x80] sm:$0xf0] }
  0xa8   : > { %v844_v13 = vor.u32 %v921_v12, %v843_v10  ;;  %v832_v16 = vor.u32 %v918_v15, %v831_v14  ;;  %v819_v17 = vld [vmem:[#allocation9 + $0x60] sm:$0xf]  ;;  %v915_v18 = vld [vmem:[#allocation9 + $0x68] sm:$0xf0]  ;;  %v807_v20 = vld [vmem:[#allocation9 + $0x48] sm:$0xf] }
  0xa9   : > { %312 = vmatpush.bf16.msra.mxu0 %v856_v11  ;;  %v820_v19 = vor.u32 %v915_v18, %v819_v17  ;;  %v912_v21 = vld [vmem:[#allocation9 + $0x50] sm:$0xf0]  ;;  %v795_v23 = vld [vmem:[#allocation9 + $0x30] sm:$0xf]  ;;  %v909_v24 = vld [vmem:[#allocation9 + $0x38] sm:$0xf0] }
  0xaa   : > { %v808_v22 = vor.u32 %v912_v21, %v807_v20  ;;  %v796_v25 = vor.u32 %v909_v24, %v795_v23  ;;  %v783_v26 = vld [vmem:[#allocation9 + $0x18] sm:$0xf]  ;;  %v906_v27 = vld [vmem:[#allocation9 + $0x20] sm:$0xf0]  ;;  %v771_v29 = vld [vmem:[#allocation9] sm:$0xf] }
  0xab   : > { %v784_v28 = vor.u32 %v906_v27, %v783_v26  ;;  %v903_v30 = vld [vmem:[#allocation9 + $0x8] sm:$0xf0]  ;;  %v353_v34 = vld [vmem:[%s1356_s5] sm:$0x1]  ;;  %s1186_s30 = smov 64   ;;  %s351_s8 = scalar_lea.vmem [#allocation2], %s1173_s2 }
  0xac   : > { %v772_v31 = vor.u32 %v903_v30, %v771_v29  ;;  %v1253_v32 = vld [vmem:[#allocation13] sm:$0x1]  ;;  %v352_v38 = vld [vmem:[%s351_s8] sm:$0x1]  ;;  %v857_v56 = vld [vmem:[#allocation9 + $0xb4] sm:$0xf0] }
  0xad   : > { %313 = vmatpush.bf16.msra.mxu0 %v844_v13  ;;  %v1257_v33 = vpack.c.bf16 %v1253_v32, %v1253_v32  ;;  %v923_v55 = vld [vmem:[#allocation9 + $0xac] sm:$0xf]  ;;  %v920_v57 = vld [vmem:[#allocation9 + $0x94] sm:$0xf]  ;;  %v845_v59 = vld [vmem:[#allocation9 + $0x9c] sm:$0xf0] }
  0xae   : > { %v860_v58 = vor.u32 %v923_v55, %v857_v56  ;;  %v848_v60 = vor.u32 %v920_v57, %v845_v59  ;;  %v917_v61 = vld [vmem:[#allocation9 + $0x7c] sm:$0xf]  ;;  %v833_v62 = vld [vmem:[#allocation9 + $0x84] sm:$0xf0]  ;;  %v914_v0 = vld [vmem:[#allocation9 + $0x64] sm:$0xf] }
  0xaf   : > { %v836_v63 = vor.u32 %v917_v61, %v833_v62  ;;  %v821_v1 = vld [vmem:[#allocation9 + $0x6c] sm:$0xf0]  ;;  %v911_v3 = vld [vmem:[#allocation9 + $0x4c] sm:$0xf]  ;;  %v809_v4 = vld [vmem:[#allocation9 + $0x54] sm:$0xf0] }
  0xb0   : > { %325 = vmatpush.bf16.msra.mxu1 %v860_v58  ;;  %v824_v2 = vor.u32 %v914_v0, %v821_v1  ;;  %v812_v7 = vor.u32 %v911_v3, %v809_v4  ;;  %v908_v8 = vld [vmem:[#allocation9 + $0x34] sm:$0xf]  ;;  %v797_v9 = vld [vmem:[#allocation9 + $0x3c] sm:$0xf0]  ;;  %v905_v11 = vld [vmem:[#allocation9 + $0x1c] sm:$0xf] }
  0xb1   : > { %314 = vmatpush.bf16.msra.mxu0 %v832_v16  ;;  %v800_v10 = vor.u32 %v908_v8, %v797_v9  ;;  %v785_v12 = vld [vmem:[#allocation9 + $0x24] sm:$0xf0]  ;;  %s1187_s9 = smov 96   ;;  %v902_v15 = vld [vmem:[#allocation9 + $0x4] sm:$0xf]  ;;  %s1188_s10 = smov 32  }
  0xb2   : > { %v788_v14 = vor.u32 %v905_v11, %v785_v12  ;;  %v773_v16 = vld [vmem:[#allocation9 + $0xc] sm:$0xf0]  ;;  %v1270_v18 = vld [vmem:[#allocation13] ss:$0 sm:$0xff]  ;;  %v851_v61 = vld [vmem:[#allocation9 + $0x98] sm:$0xf] }
  0xb3   : > { %v776_v17 = vor.u32 %v902_v15, %v773_v16  ;;  %v926_v20 = vld [vmem:[#allocation8 + $0x10] sm:$0xff]  ;;  %v839_v1 = vld [vmem:[#allocation9 + $0x80] sm:$0xf]  ;;  %v827_v4 = vld [vmem:[#allocation9 + $0x68] sm:$0xf]  ;;  %s715_s16 = scalar_lea.vmem [#allocation12], %s1173_s2 }
  0xb4   : > { %326 = vmatpush.bf16.msra.mxu1 %v848_v60  ;;  %v863_v59 = vld [vmem:[#allocation9 + $0xb0] sm:$0xf]  ;;  %v925_v60 = vld [vmem:[#allocation9 + $0xb8] sm:$0xf0]  ;;  %v803_v12 = vld [vmem:[#allocation9 + $0x38] sm:$0xf] }
  0xb5   : > { %315 = vmatpush.bf16.msra.mxu0 %v820_v19  ;;  %v927_v19 = vld [vmem:[#allocation8 + $0x18] sm:$0xff]  ;;  %v864_v62 = vor.u32 %v925_v60, %v863_v59  ;;  %v791_v16 = vld [vmem:[#allocation9 + $0x20] sm:$0xf]  ;;  %s149_s2 = sadd.s32 1, %s1173_s2  }
  0xb6   : > { %431 = vmatpush.bf16.msra.mxu3 %v927_v19  ;;  %v913_v8 = vld [vmem:[#allocation9 + $0x58] sm:$0xf0]  ;;  %p146_p0 = scmp.ge.s32.totalorder %s149_s2, 8  }
  0xb7   : > { %338 = vmatpush.bf16.msra.mxu2 %v864_v62  ;;  %s725_s3 = sshll.u32 (%p146_p0), %s1357_s6, 4  ;;  %s1189_s19 = smov (%p146_p0), [#allocation12]   ;;  %s726_s3 = int_to_ptr.hbm [resolvable:$true] %s725_s3 }
  0xb8   : > { %327 = vmatpush.bf16.msra.mxu1 %v836_v63  ;;  %v922_v63 = vld [vmem:[#allocation9 + $0xa0] sm:$0xf0]  ;;  %s723_s20 = sshll.u32 (%p146_p0), %s1189_s19, 4  ;;  %s1190_s21 = smov (%p146_p0), [#allocation13]   ;;  %s724_s20 = int_to_ptr.vmem [resolvable:$true] %s723_s20 }
  0xb9   : > { %316 = vmatpush.bf16.msra.mxu0 %v808_v22  ;;  %v852_v0 = vor.u32 %v922_v63, %v851_v61  ;;  %s734_s22 = sshll.u32 (%p146_p0), %s1190_s21, 4  ;;  %s736_s0 = sshll.u32 (%p146_p0), %s1358_s7, 4  ;;  %s735_s22 = int_to_ptr.vmem [resolvable:$true] %s734_s22  ;;  %s737_s0 = int_to_ptr.hbm [resolvable:$true] %s736_s0 }
  0xba   : > { %432 = vmatpush.bf16.msra.mxu3 %v926_v20 }
  0xbb   : > { %339 = vmatpush.bf16.msra.mxu2 %v852_v0 }
  0xbc   : > { %328 = vmatpush.bf16.msra.mxu1 %v824_v2  ;;  %v919_v2 = vld [vmem:[#allocation9 + $0x88] sm:$0xf0] }
  0xbd   : > { %317 = vmatpush.bf16.msra.mxu0 %v796_v25  ;;  %v840_v3 = vor.u32 %v919_v2, %v839_v1 }
  0xbf   : > { %340 = vmatpush.bf16.msra.mxu2 %v840_v3 }
  0xc0   : > { %329 = vmatpush.bf16.msra.mxu1 %v812_v7  ;;  %v815_v7 = vld [vmem:[#allocation9 + $0x50] sm:$0xf] }
  0xc1   : > { %318 = vmatpush.bf16.msra.mxu0 %v784_v28  ;;  %v958_v28 = vld [vmem:[%s1356_s5 + $0x1] ss:$0 sm:$0xff]  ;;  %v816_v11 = vor.u32 %v913_v8, %v815_v7 }
  0xc4   : > { %330 = vmatpush.bf16.msra.mxu1 %v800_v10 }
  0xc5   : > { %319 = vmatpush.bf16.msra.mxu0 %v772_v31 }
  0xc8   : > { %320 = vmatmul.bf16.vlgmr.msra.gmra.mxu0 %v1257_v33  ;;  %331 = vmatpush.bf16.msra.mxu1 %v788_v14 }
  0xcc   : > { %332 = vmatpush.bf16.msra.mxu1 %v776_v17  ;;  %v907_v17 = vld [vmem:[#allocation9 + $0x28] sm:$0xf0] }
  0xcd   : > { %v792_v20 = vor.u32 %v907_v17, %v791_v16 }
  0xcf   : > { %333 = vmatmul.bf16.vlgmr.msra.gmra.mxu1 %v1257_v33 }
 0x145   : > { %v1263_v35 = vpop.f32.mrf.mxu0 }
 0x146   : > { %v354_v36 = vadd.f32 %v353_v34, %v1263_v35 }
 0x148   : > { %376 = vrot.lane.b32.xlu0 %v354_v36, %s1186_s30  ;;  %v355_v39 = vadd.f32 %v354_v36, %v352_v38 }
 0x14a   : > { %v865_v40 = vmul.f32 -1.442695, %v355_v39  ;;  %v406_v39 = vld [vmem:[#allocation11 + $0x1] sm:$0x1] }
 0x14c   : > { %961 = vpow2.f32 %v865_v40  ;;  %v1284_v29 = vpop.f32.mrf.mxu1 }
 0x14d   : > { %v323_v37 = vpop.f32.mrf.mxu0 }
 0x152   : > { %v962_v41 = vpop.eup %961 }
 0x153   : > { %v359_v42 = vadd.f32 1.0, %v962_v41 }
 0x154   : > { %v336_v30 = vpop.f32.mrf.mxu1 }
 0x155   : > { %963 = vrcp.f32 %v359_v42  ;;  %v371_v48 = vand.u32 2147483648, %v359_v42  ;;  %vm365_vm3 = vweird.f32 %v359_v42  ;;  %v369_v49 = vand.u32 2147483647, %v359_v42 }
 0x157   : > { %v372_v51 = vor.u32 1.1754944e-38, %v371_v48  ;;  %vm370_vm5 = vcmp.eq.f32.partialorder %v369_v49, 8.507059e+37 }
 0x15b   : > { %v964_v43 = vpop.eup %963 }
 0x15c   : > { %v361_v44 = vmul.f32 %v964_v43, %v359_v42  ;;  %vm366_vm2 = vweird.f32 %v964_v43 }
 0x15d   : > { %vm367_vm4 = vmor %vm365_vm3, %vm366_vm2 }
 0x15e   : > { %v362_v45 = vsub.f32 1.0, %v361_v44 }
 0x160   : > { %v363_v46 = vmul.f32 %v964_v43, %v362_v45 }
 0x162   : > { %v364_v47 = vadd.f32 %v964_v43, %v363_v46 }
 0x164   : > { %v368_v50 = vsel %vm367_vm4, %v964_v43, %v364_v47 }
 0x165   : > { %v373_v53 = vsel %vm370_vm5, %v372_v51, %v368_v50 }
 0x166   : > { %v386_v22 = vsub.f32 1.0, %v373_v53 }
 0x1ba   : > { %v377_v52 = vpop.permute.xlu0 %376 }
 0x1bb   : > { %v379_v54 = vmul.f32 %v377_v52, %v373_v53 }
 0x1bd   : > { %381 = vrot.lane.b32.xlu0 %v379_v54, %s1186_s30 }
 0x22f   : > { %v382_v5 = vpop.permute.xlu0 %381 }
 0x230   : > { %v384_v6 = vadd.f32 %v382_v5, %v352_v38  ;;  %v959_v38 = vld [vmem:[%s1356_s5 + $0x2] ss:$0 sm:$0xff] }
 0x231   : > { %v916_v5 = vld [vmem:[#allocation9 + $0x70] sm:$0xf0] }
 0x232   : > { %965 = vtanh.f32 %v384_v6  ;;  %v828_v6 = vor.u32 %v916_v5, %v827_v4 }
 0x234   : > { %341 = vmatpush.bf16.msra.mxu2 %v828_v6 }
 0x238   : > { %v966_v13 = vpop.eup %965  ;;  %342 = vmatpush.bf16.msra.mxu2 %v816_v11 }
 0x239   : > { %388 = vrot.lane.b32.xlu1 %v966_v13, %s1187_s9  ;;  %v910_v13 = vld [vmem:[#allocation9 + $0x40] sm:$0xf0] }
 0x23a   : > { %v804_v15 = vor.u32 %v910_v13, %v803_v12  ;;  %v960_v12 = vld [vmem:[%s1356_s5 + $0x3] ss:$0 sm:$0xff]  ;;  %v931_v13 = vld [vmem:[#allocation8 + $0x38] sm:$0xff] }
 0x23c   : > { %343 = vmatpush.bf16.msra.mxu2 %v804_v15 }
 0x240   : > { %344 = vmatpush.bf16.msra.mxu2 %v792_v20 }
 0x241   : > { %394 = vrot.lane.b32.xlu1 %v1270_v18, %s1188_s10 }
 0x2ab   : > { %v389_v21 = vpop.permute.xlu1 %388 }
 0x2ac   : > { %v391_v24 = vmul.f32 %v389_v21, %v386_v22  ;;  %v779_v21 = vld [vmem:[#allocation9 + $0x8] sm:$0xf]  ;;  %v904_v22 = vld [vmem:[#allocation9 + $0x10] sm:$0xf0] }
 0x2b3   : > { %v395_v23 = vpop.permute.xlu1 %394 }
 0x2b4   : > { %v397_v25 = vmul.f32 %v395_v23, %v373_v53 }
 0x2b6   : > { %v1275_v26 = vadd.f32 %v397_v25, %v391_v24  ;;  %v780_v24 = vor.u32 %v904_v22, %v779_v21 }
 0x2b8   : > { %v399_v27 = vpack.c.bf16 %v1275_v26, %v1275_v26  ;;  %345 = vmatpush.bf16.msra.mxu2 %v780_v24 }
 0x2ba   : > { %408 = vrot.lane.b32.xlu2 %v399_v27, %s1187_s9 }
 0x2bb   : > { %346 = vmatmul.bf16.vlgmr.msra.gmra.mxu2 %v1257_v33 }
 0x2c2   : > { %442 = vrot.lane.b32.xlu2 %v958_v28, %s1187_s9 }
 0x314   : > { %v409_v31 = vpop.permute.xlu2 %408 }
 0x315   : > { %874 = vmatmul.msk.bf16.vlgmr.msra.gmra.mxu3 %vm123_vm0, %v409_v31 }
 0x31c   : > { %v443_v34 = vpop.permute.xlu2 %442 }
 0x31d   : > { %v445_v36 = vadd.f32 %v443_v34, %v1263_v35  ;;  %v446_v37 = vadd.f32 %v443_v34, %v1284_v29 }
 0x31f   : > { %448 = vrot.lane.b32.xlu0 %v445_v36, %s1188_s10  ;;  %495 = vrot.lane.b32.xlu1 %v446_v37, %s1187_s9  ;;  %v929_v36 = vld [vmem:[#allocation8 + $0x28] sm:$0xff] }
 0x320   : > { %545 = vmatpush.bf16.msrb.mxu3 %v929_v36 }
 0x327   : > { %472 = vrot.lane.b32.xlu0 %v446_v37, %s1188_s10 }
 0x32f   : > { %556 = vrot.lane.b32.xlu0 %v959_v38, %s1186_s30 }
 0x391   : > { %v449_v42 = vpop.permute.xlu0 %448  ;;  %v496_v56 = vpop.permute.xlu1 %495 }
 0x398   : > { %v434_v40 = vpop.f32.mrf.mxu3 }
 0x399   : > { %v1296_v41 = vadd.f32 %v434_v40, %v406_v39  ;;  %v473_v14 = vpop.permute.xlu0 %472 }
 0x39b   : > { %v451_v35 = vadd.f32 %v449_v42, %v1296_v41  ;;  %v475_v27 = vadd.f32 %v473_v14, %v1296_v41  ;;  %v930_v14 = vld [vmem:[#allocation8 + $0x30] sm:$0xff] }
 0x39d   : > { %v876_v43 = vmul.f32 -1.442695, %v451_v35  ;;  %v877_v28 = vmul.f32 -1.442695, %v475_v27  ;;  %v610_v27 = vld [vmem:[#allocation11 + $0x3] sm:$0x1] }
 0x39f   : > { %967 = vpow2.f32 %v876_v43 }
 0x3a0   : > { %v436_v44 = vpop.f32.mrf.mxu3 }
 0x3a1   : > { %v1302_v23 = vpop.permute.xlu0 %556 }
 0x3a2   : > { %v559_v25 = vadd.f32 %v1302_v23, %v1284_v29  ;;  %v928_v29 = vld [vmem:[#allocation8 + $0x20] sm:$0xff] }
 0x3a3   : > { %546 = vmatpush.bf16.msrb.mxu3 %v928_v29 }
 0x3a5   : > { %v968_v45 = vpop.eup %967 }
 0x3a6   : > { %v455_v46 = vadd.f32 1.0, %v968_v45 }
 0x3a7   : > { %635 = vmatpush.bf16.msra.mxu3 %v931_v13 }
 0x3a8   : > { %969 = vrcp.f32 %v455_v46  ;;  %v467_v50 = vand.u32 2147483648, %v455_v46  ;;  %v465_v52 = vand.u32 2147483647, %v455_v46  ;;  %vm461_vm7 = vweird.f32 %v455_v46 }
 0x3aa   : > { %v468_v54 = vor.u32 1.1754944e-38, %v467_v50  ;;  %vm466_vm9 = vcmp.eq.f32.partialorder %v465_v52, 8.507059e+37  ;;  %v347_v50 = vpop.f32.mrf.mxu2 }
 0x3ab   : > { %v560_v5 = vadd.f32 %v1302_v23, %v347_v50  ;;  %636 = vmatpush.bf16.msra.mxu3 %v930_v14 }
 0x3ae   : > { %v970_v47 = vpop.eup %969 }
 0x3af   : > { %v457_v48 = vmul.f32 %v970_v47, %v455_v46  ;;  %vm462_vm6 = vweird.f32 %v970_v47 }
 0x3b0   : > { %vm463_vm8 = vmor %vm461_vm7, %vm462_vm6 }
 0x3b1   : > { %v458_v49 = vsub.f32 1.0, %v457_v48 }
 0x3b3   : > { %v459_v51 = vmul.f32 %v970_v47, %v458_v49 }
 0x3b5   : > { %v460_v53 = vadd.f32 %v970_v47, %v459_v51  ;;  %v349_v51 = vpop.f32.mrf.mxu2 }
 0x3b7   : > { %v464_v55 = vsel %vm463_vm8, %v970_v47, %v460_v53  ;;  %v520_v53 = vld [vmem:[#allocation11 + $0x2] sm:$0x1]  ;;  %vm708_vm8 = vcmask 523264  }
 0x3b8   : > { %v469_v57 = vsel %vm466_vm9, %v468_v54, %v464_v55  ;;  %vm716_vm9 = vcmask 253952  }
 0x3b9   : > { %v498_v58 = vmul.f32 %v496_v56, %v469_v57 }
 0x3bb   : > { %500 = vrot.lane.b32.xlu2 %v498_v58, %s1186_s30 }
 0x415   : > { %v501_v9 = vpop.permute.xlu2 %500 }
 0x416   : > { %v503_v10 = vadd.f32 %v501_v9, %v1296_v41 }
 0x418   : > { %971 = vtanh.f32 %v503_v10 }
 0x419   : > { %973 = vpow2.f32 %v877_v28 }
 0x41e   : > { %v972_v19 = vpop.eup %971 }
 0x41f   : > { %507 = vrot.lane.b32.xlu1 %v972_v19, %s1187_s9  ;;  %v974_v30 = vpop.eup %973 }
 0x420   : > { %v479_v31 = vadd.f32 1.0, %v974_v30 }
 0x422   : > { %975 = vrcp.f32 %v479_v31  ;;  %v491_v33 = vand.u32 2147483648, %v479_v31  ;;  %vm485_vm11 = vweird.f32 %v479_v31  ;;  %v489_v42 = vand.u32 2147483647, %v479_v31 }
 0x424   : > { %v492_v35 = vor.u32 1.1754944e-38, %v491_v33  ;;  %vm490_vm13 = vcmp.eq.f32.partialorder %v489_v42, 8.507059e+37 }
 0x427   : > { %562 = vrot.lane.b32.xlu1 %v559_v25, %s1186_s30 }
 0x428   : > { %v976_v34 = vpop.eup %975 }
 0x429   : > { %v481_v37 = vmul.f32 %v976_v34, %v479_v31  ;;  %vm486_vm10 = vweird.f32 %v976_v34 }
 0x42a   : > { %vm487_vm12 = vmor %vm485_vm11, %vm486_vm10 }
 0x42b   : > { %v482_v38 = vsub.f32 1.0, %v481_v37 }
 0x42d   : > { %v483_v39 = vmul.f32 %v976_v34, %v482_v38 }
 0x42f   : > { %598 = vrot.lane.b32.xlu1 %v1270_v18, %s1187_s9  ;;  %v484_v40 = vadd.f32 %v976_v34, %v483_v39 }
 0x431   : > { %v488_v41 = vsel %vm487_vm12, %v976_v34, %v484_v40 }
 0x432   : > { %v493_v43 = vsel %vm490_vm13, %v492_v35, %v488_v41 }
 0x433   : > { %v505_v44 = vsub.f32 1.0, %v493_v43  ;;  %v511_v47 = vmul.f32 %v493_v43, %v1253_v32 }
 0x491   : > { %v508_v45 = vpop.permute.xlu1 %507 }
 0x492   : > { %v510_v46 = vmul.f32 %v508_v45, %v505_v44 }
 0x494   : > { %v1312_v48 = vadd.f32 %v511_v47, %v510_v46 }
 0x496   : > { %v513_v49 = vpack.c.bf16 %v1312_v48, %v1312_v48 }
 0x498   : > { %522 = vrot.lane.b32.xlu2 %v513_v49, %s1187_s9 }
 0x499   : > { %v563_v56 = vpop.permute.xlu1 %562 }
 0x4a1   : > { %v599_v15 = vpop.permute.xlu1 %598 }
 0x4f2   : > { %v523_v52 = vpop.permute.xlu2 %522 }
 0x4f3   : > { %886 = vmatmul.msk.bf16.vlgmr.msrb.gmra.mxu3 %vm123_vm0, %v523_v52 }
 0x576   : > { %v548_v54 = vpop.f32.mrf.mxu3 }
 0x577   : > { %v549_v55 = vadd.f32 %v548_v54, %v520_v53 }
 0x579   : > { %v565_v57 = vadd.f32 %v563_v56, %v549_v55 }
 0x57b   : > { %v888_v58 = vmul.f32 -1.442695, %v565_v57 }
 0x57d   : > { %977 = vpow2.f32 %v888_v58 }
 0x57e   : > { %v550_v32 = vpop.f32.mrf.mxu3 }
 0x583   : > { %v978_v59 = vpop.eup %977 }
 0x584   : > { %v569_v60 = vadd.f32 1.0, %v978_v59 }
 0x586   : > { %979 = vrcp.f32 %v569_v60  ;;  %v581_v0 = vand.u32 2147483648, %v569_v60  ;;  %v579_v2 = vand.u32 2147483647, %v569_v60  ;;  %vm575_vm15 = vweird.f32 %v569_v60 }
 0x588   : > { %v582_v4 = vor.u32 1.1754944e-38, %v581_v0  ;;  %vm580_vm3 = vcmp.eq.f32.partialorder %v579_v2, 8.507059e+37 }
 0x58c   : > { %v980_v61 = vpop.eup %979 }
 0x58d   : > { %v571_v62 = vmul.f32 %v980_v61, %v569_v60  ;;  %vm576_vm14 = vweird.f32 %v980_v61 }
 0x58e   : > { %vm577_vm2 = vmor %vm575_vm15, %vm576_vm14 }
 0x58f   : > { %v572_v63 = vsub.f32 1.0, %v571_v62 }
 0x591   : > { %v573_v1 = vmul.f32 %v980_v61, %v572_v63 }
 0x593   : > { %v574_v3 = vadd.f32 %v980_v61, %v573_v1 }
 0x595   : > { %v578_v6 = vsel %vm577_vm2, %v980_v61, %v574_v3 }
 0x596   : > { %v583_v7 = vsel %vm580_vm3, %v582_v4, %v578_v6 }
 0x597   : > { %v585_v8 = vmul.f32 %v583_v7, %v560_v5  ;;  %v592_v16 = vsub.f32 1.0, %v583_v7  ;;  %v601_v19 = vmul.f32 %v599_v15, %v583_v7 }
 0x599   : > { %587 = vrot.lane.b32.xlu2 %v585_v8, %s1186_s30 }
 0x5f3   : > { %v588_v9 = vpop.permute.xlu2 %587 }
 0x5f4   : > { %v590_v10 = vadd.f32 %v588_v9, %v549_v55 }
 0x5f6   : > { %981 = vtanh.f32 %v590_v10 }
 0x5fc   : > { %v982_v11 = vpop.eup %981 }
 0x5fd   : > { %594 = vrot.lane.b32.xlu0 %v982_v11, %s1187_s9 }
 0x605   : > { %646 = vrot.lane.b32.xlu0 %v960_v12, %s1188_s10 }
 0x66f   : > { %v595_v17 = vpop.permute.xlu0 %594 }
 0x670   : > { %v597_v20 = vmul.f32 %v595_v17, %v592_v16 }
 0x672   : > { %v602_v21 = vadd.f32 %v601_v19, %v597_v20 }
 0x674   : > { %v603_v22 = vpack.c.bf16 %v602_v21, %v602_v21 }
 0x676   : > { %612 = vrot.lane.b32.xlu2 %v603_v22, %s1187_s9 }
 0x677   : > { %v647_v23 = vpop.permute.xlu0 %646 }
 0x678   : > { %v649_v24 = vadd.f32 %v647_v23, %v347_v50 }
 0x67a   : > { %651 = vrot.lane.b32.xlu1 %v649_v24, %s1187_s9 }
 0x67e   : > { %674 = vrot.lane.b32.xlu2 %v649_v24, %s1188_s10 }
 0x686   : > { %690 = vrot.lane.b32.xlu2 %v1270_v18, %s1186_s30 }
 0x6d0   : > { %v613_v25 = vpop.permute.xlu2 %612 }
 0x6d1   : > { %897 = vmatmul.msk.bf16.vlgmr.msra.gmra.mxu3 %vm123_vm0, %v613_v25 }
 0x6d8   : > { %v675_v45 = vpop.permute.xlu2 %674 }
 0x6e0   : > { %v691_v52 = vpop.permute.xlu2 %690 }
 0x6ec   : > { %v652_v31 = vpop.permute.xlu1 %651 }
 0x754   : > { %v638_v28 = vpop.f32.mrf.mxu3 }
 0x755   : > { %v639_v30 = vadd.f32 %v638_v28, %v610_v27 }
 0x757   : > { %v654_v34 = vadd.f32 %v652_v31, %v639_v30 }
 0x759   : > { %v899_v36 = vmul.f32 -1.442695, %v654_v34 }
 0x75b   : > { %983 = vpow2.f32 %v899_v36 }
 0x75c   : > { %v640_v37 = vpop.f32.mrf.mxu3 }
 0x761   : > { %v984_v29 = vpop.eup %983 }
 0x762   : > { %v658_v38 = vadd.f32 1.0, %v984_v29 }
 0x764   : > { %985 = vrcp.f32 %v658_v38  ;;  %v670_v42 = vand.u32 2147483648, %v658_v38  ;;  %v668_v18 = vand.u32 2147483647, %v658_v38  ;;  %vm664_vm5 = vweird.f32 %v658_v38 }
 0x766   : > { %v671_v43 = vor.u32 1.1754944e-38, %v670_v42  ;;  %vm669_vm7 = vcmp.eq.f32.partialorder %v668_v18, 8.507059e+37 }
 0x76a   : > { %v986_v39 = vpop.eup %985 }
 0x76b   : > { %v660_v40 = vmul.f32 %v986_v39, %v658_v38  ;;  %vm665_vm4 = vweird.f32 %v986_v39 }
 0x76c   : > { %vm666_vm6 = vmor %vm664_vm5, %vm665_vm4 }
 0x76d   : > { %v661_v33 = vsub.f32 1.0, %v660_v40 }
 0x76f   : > { %v662_v41 = vmul.f32 %v986_v39, %v661_v33 }
 0x771   : > { %v663_v35 = vadd.f32 %v986_v39, %v662_v41 }
 0x773   : > { %v667_v44 = vsel %vm666_vm6, %v986_v39, %v663_v35 }
 0x774   : > { %v672_v46 = vsel %vm669_vm7, %v671_v43, %v667_v44 }
 0x775   : > { %v677_v47 = vmul.f32 %v675_v45, %v672_v46  ;;  %v684_v53 = vsub.f32 1.0, %v672_v46  ;;  %v693_v55 = vmul.f32 %v691_v52, %v672_v46 }
 0x777   : > { %679 = vrot.lane.b32.xlu0 %v677_v47, %s1186_s30 }
 0x77f   : > { %696 = vrot.lane.b32.xlu0 %v1275_v26, %s1187_s9 }
 0x7e9   : > { %v680_v49 = vpop.permute.xlu0 %679 }
 0x7ea   : > { %v682_v50 = vadd.f32 %v680_v49, %v639_v30 }
 0x7ec   : > { %987 = vtanh.f32 %v682_v50 }
 0x7f1   : > { %v697_v26 = vpop.permute.xlu0 %696 }
 0x7f2   : > { %v988_v51 = vpop.eup %987  ;;  %v707_v32 = vsel %vm123_vm0, %v697_v26, %v1312_v48 }
 0x7f3   : > { %686 = vrot.lane.b32.xlu1 %v988_v51, %s1187_s9 }
 0x7fb   : > { %700 = vrot.lane.b32.xlu1 %v602_v21, %s1188_s10 }
 0x865   : > { %v687_v54 = vpop.permute.xlu1 %686 }
 0x866   : > { %v689_v56 = vmul.f32 %v687_v54, %v684_v53 }
 0x868   : > { %v694_v57 = vadd.f32 %v693_v55, %v689_v56 }
 0x86a   : > { %712 = vrot.lane.b32.xlu0 %v694_v57, %s1187_s9  ;;  %704 = vrot.lane.b32.xlu2 %v694_v57, %s1186_s30 }
 0x86d   : > { %v701_v58 = vpop.permute.xlu1 %700 }
 0x86e   : > { %v709_v60 = vsel %vm708_vm8, %v707_v32, %v701_v58 }
 0x8c4   : > { %v705_v59 = vpop.permute.xlu2 %704 }
 0x8c5   : > { %v710_v61 = vsel %vm140_vm1, %v709_v60, %v705_v59 }
 0x8c6   : > { %711 = vst [vmem:[#allocation13] sm:$0x1] %v710_v61 }
 0x8c7   :  { %739 = dma.vmem_to_hbm [thread:$0]  (%p146_p0), %s735_s22, 16, %s737_s0, [#allocation14]  }
 0x8d9   :  { %148 = sbr.rel (!%p146_p0) target bundleno = 166 (0xa6), region = 90 }
 0x8dc   : > { %v713_v62 = vpop.permute.xlu0 %712 }
 0x8dd   : > { %717 = vst.msk [vmem:[%s715_s16] sm:$0x1] %vm716_vm9, %v713_v62 }
 0x8de   :  { %728 = dma.vmem_to_hbm [thread:$0]  %s724_s20, 128, %s726_s3, [#allocation5]  }
 0x8df   :  { %1167 = dma.done.wait [#allocation5], 128  }
 0x8e0   :  { %1168 = vsyncadd [#allocation5], 4294967168 }
 0x8e1   :  { %1169 = dma.done.wait [#allocation14], 16  }
 0x8e2   :  { %1170 = vsyncadd [#allocation14], 4294967280 }
 0x8e3   :  { %748 = vsyncpa [#allocation4], 1 }
 0x8e4   :  { %749 = vsyncpa [#allocation7], 1 }
 0x8e5   :  { %750 = vsyncpa [#allocation10], 1 }
 0x8e6   :  { %751 = vsyncpa [#allocation5], 1 }
 0x8e7   :  { %752 = vsyncpa [#allocation14], 1 }

</bundles_post_ra>
